<compile_context>
chip_gen: v5e
topology: v5e:2x2
jax: 0.10.0
libtpu: 0.0.40
codegen_flags: <defaults>
</compile_context>

<pallas_src>
import math

import jax
import jax.numpy as jnp
from jax.experimental import pallas as pl
from jax.experimental.pallas import tpu as pltpu

_LANES = 128
# Per-operand byte threshold above which we switch to a gridded, pipelined path.
_GRID_THRESHOLD_BYTES = 2 << 20  # 2 MiB
_BLOCK_ROWS = 512                # measured ~85% of HBM roofline for f32 adds


def _add_kernel(a_ref, b_ref, o_ref):
    # Whole-block elementwise add on the VPU.
    o_ref[...] = a_ref[...] + b_ref[...]


def pallas_add(x302: jax.Array, x287: jax.Array) -> jax.Array:
    """Elementwise add reproducing `operator.add(x302, x287)` (same shapes/dtype)."""
    assert x302.shape == x287.shape, "module uses same-shape add (no broadcasting)"
    assert x302.dtype == x287.dtype
    orig_shape = x302.shape
    dtype = x302.dtype
    itemsize = jnp.dtype(dtype).itemsize

    total = math.prod(orig_shape)
    padded = pl.cdiv(total, _LANES) * _LANES

    # Lane-dense slab: flatten row-major and pad (with zeros) to a multiple of
    # 128 so every vreg has all 128 lanes live and stores are unmasked vst.
    a = x302.reshape(-1)
    b = x287.reshape(-1)
    if padded != total:
        a = jnp.pad(a, (0, padded - total))
        b = jnp.pad(b, (0, padded - total))
    rows = padded // _LANES
    a2 = a.reshape(rows, _LANES)
    b2 = b.reshape(rows, _LANES)

    # Accurate (tiny) cost: total flops, 2 reads + 1 write of the real payload.
    cost = pl.CostEstimate(
        flops=total,
        bytes_accessed=3 * total * itemsize,
        transcendentals=0,
    )

    bytes_per_operand = padded * itemsize
    if bytes_per_operand <= _GRID_THRESHOLD_BYTES:
        # Launch-overhead-bound regime: single whole-array VMEM block, no grid.
        out2 = pl.pallas_call(
            _add_kernel,
            out_shape=jax.ShapeDtypeStruct((rows, _LANES), dtype),
            in_specs=[
                pl.BlockSpec(memory_space=pltpu.MemorySpace.VMEM),
                pl.BlockSpec(memory_space=pltpu.MemorySpace.VMEM),
            ],
            out_specs=pl.BlockSpec(memory_space=pltpu.MemorySpace.VMEM),
            cost_estimate=cost,
        )(a2, b2)
    else:
        # Memory-bound regime: 1-D grid of lane-dense (512, 128) blocks,
        # double-buffered by BlockSpec pipelining; parallel axis lets v7x
        # split the work across its two TensorCores.
        grid = (pl.cdiv(rows, _BLOCK_ROWS),)
        out2 = pl.pallas_call(
            _add_kernel,
            out_shape=jax.ShapeDtypeStruct((rows, _LANES), dtype),
            grid=grid,
            in_specs=[
                pl.BlockSpec((_BLOCK_ROWS, _LANES), lambda i: (i, 0)),
                pl.BlockSpec((_BLOCK_ROWS, _LANES), lambda i: (i, 0)),
            ],
            out_specs=pl.BlockSpec((_BLOCK_ROWS, _LANES), lambda i: (i, 0)),
            compiler_params=pltpu.CompilerParams(
                dimension_semantics=("parallel",)
            ),
            cost_estimate=cost,
        )(a2, b2)

    out = out2.reshape(-1)
    if padded != total:
        out = out[:total]
    return out.reshape(orig_shape)


if __name__ == "__main__":
    key = jax.random.PRNGKey(0)
    k1, k2 = jax.random.split(key)

    # Shapes implied by the module's forward: [1, 160, 14, 14].
    x302 = jax.random.normal(k1, (1, 160, 14, 14), dtype=jnp.float32)
    x287 = jax.random.normal(k2, (1, 160, 14, 14), dtype=jnp.float32)

    ref = x302 + x287

    add_fn = jax.jit(pallas_add)
    out = add_fn(x302, x287)
    out = jax.block_until_ready(out)

    assert out.shape == ref.shape
    assert out.dtype == ref.dtype
    assert jnp.allclose(out, ref, atol=1e-6, rtol=1e-6)

    print("KERNEL_OK")
</pallas_src>

<mosaic_0001>
module attributes {stable_mosaic.version = 11 : i64} {
  func.func @_add_kernel(%arg0: memref<245x128xf32, #tpu.memory_space<vmem>>, %arg1: memref<245x128xf32, #tpu.memory_space<vmem>>, %arg2: memref<245x128xf32, #tpu.memory_space<vmem>>) attributes {dimension_semantics = [], scalar_prefetch = 0 : i64, scratch_operands = 0 : i64, tpu.core_type = #tpu.core_type<tc>} {
    %c0 = arith.constant 0 : index
    %c0_0 = arith.constant 0 : index
    %0 = vector.load %arg0[%c0, %c0_0] : memref<245x128xf32, #tpu.memory_space<vmem>>, vector<245x128xf32>
    %c0_1 = arith.constant 0 : index
    %c0_2 = arith.constant 0 : index
    %1 = vector.load %arg1[%c0_1, %c0_2] : memref<245x128xf32, #tpu.memory_space<vmem>>, vector<245x128xf32>
    %2 = arith.addf %0, %1 : vector<245x128xf32>
    %c0_3 = arith.constant 0 : index
    %c0_4 = arith.constant 0 : index
    %3 = vector.load %arg2[%c0_3, %c0_4] : memref<245x128xf32, #tpu.memory_space<vmem>>, vector<245x128xf32>
    tpu.vector_store %arg2[%c0_3, %c0_4], %2 {strides = array<i32>} : memref<245x128xf32, #tpu.memory_space<vmem>>, vector<245x128xf32>,
    return
  }
}

</mosaic_0001>

<bundles_post_ra>
// kernel: pallas_add.1
= control target key start
LH: loop header
LB: loop body
LE: loop exit
PB: predicated region body
PF: predicated region fallthrough
CT: control target
= control target key end

     0   :  { %s433_s0 = inlined_call_operand.vmem [shape: f32[245,128], index: 0, kind: input, shape index: {}]   ;;  %s434_s1 = inlined_call_operand.vmem [shape: f32[245,128], index: 1, kind: input, shape index: {}]   ;;  %s435_s2 = inlined_call_operand.vmem [shape: f32[245,128], index: 2, kind: output, shape index: {}]  }
   0x1   :  { %v11_v0 = vld [vmem:[%s433_s0] sm:$0xff]  ;;  %v12_v2 = vld [vmem:[%s433_s0 + $0x8] sm:$0xff]  ;;  %v13_v5 = vld [vmem:[%s433_s0 + $0x10] sm:$0xff] }
   0x2   :  { %v42_v1 = vld [vmem:[%s434_s1] sm:$0xff]  ;;  %v43_v4 = vld [vmem:[%s434_s1 + $0x8] sm:$0xff]  ;;  %v44_v6 = vld [vmem:[%s434_s1 + $0x10] sm:$0xff] }
   0x3   :  { %v73_v3 = vadd.f32 %v42_v1, %v11_v0  ;;  %v74_v7 = vadd.f32 %v43_v4, %v12_v2  ;;  %v75_v8 = vadd.f32 %v44_v6, %v13_v5  ;;  %v14_v9 = vld [vmem:[%s433_s0 + $0x18] sm:$0xff]  ;;  %v15_v11 = vld [vmem:[%s433_s0 + $0x20] sm:$0xff]  ;;  %v16_v14 = vld [vmem:[%s433_s0 + $0x28] sm:$0xff] }
   0x4   :  { %v45_v10 = vld [vmem:[%s434_s1 + $0x18] sm:$0xff]  ;;  %v46_v13 = vld [vmem:[%s434_s1 + $0x20] sm:$0xff]  ;;  %v47_v15 = vld [vmem:[%s434_s1 + $0x28] sm:$0xff] }
   0x5   :  { %104 = vst [vmem:[%s435_s2] sm:$0xff] %v73_v3  ;;  %v76_v12 = vadd.f32 %v45_v10, %v14_v9  ;;  %v77_v16 = vadd.f32 %v46_v13, %v15_v11  ;;  %v78_v17 = vadd.f32 %v47_v15, %v16_v14  ;;  %v17_v18 = vld [vmem:[%s433_s0 + $0x30] sm:$0xff]  ;;  %v18_v20 = vld [vmem:[%s433_s0 + $0x38] sm:$0xff]  ;;  %v19_v23 = vld [vmem:[%s433_s0 + $0x40] sm:$0xff] }
   0x6   :  { %105 = vst [vmem:[%s435_s2 + $0x8] sm:$0xff] %v74_v7  ;;  %v48_v19 = vld [vmem:[%s434_s1 + $0x30] sm:$0xff]  ;;  %v49_v22 = vld [vmem:[%s434_s1 + $0x38] sm:$0xff]  ;;  %v50_v24 = vld [vmem:[%s434_s1 + $0x40] sm:$0xff] }
   0x7   :  { %106 = vst [vmem:[%s435_s2 + $0x10] sm:$0xff] %v75_v8  ;;  %v79_v21 = vadd.f32 %v48_v19, %v17_v18  ;;  %v80_v25 = vadd.f32 %v49_v22, %v18_v20  ;;  %v20_v26 = vld [vmem:[%s433_s0 + $0x48] sm:$0xff]  ;;  %v21_v28 = vld [vmem:[%s433_s0 + $0x50] sm:$0xff]  ;;  %v81_v29 = vadd.f32 %v50_v24, %v19_v23  ;;  %v22_v31 = vld [vmem:[%s433_s0 + $0x58] sm:$0xff] }
   0x8   :  { %107 = vst [vmem:[%s435_s2 + $0x18] sm:$0xff] %v76_v12  ;;  %v51_v27 = vld [vmem:[%s434_s1 + $0x48] sm:$0xff]  ;;  %v52_v30 = vld [vmem:[%s434_s1 + $0x50] sm:$0xff]  ;;  %v53_v32 = vld [vmem:[%s434_s1 + $0x58] sm:$0xff] }
   0x9   :  { %108 = vst [vmem:[%s435_s2 + $0x20] sm:$0xff] %v77_v16  ;;  %v82_v33 = vadd.f32 %v51_v27, %v20_v26  ;;  %v23_v34 = vld [vmem:[%s433_s0 + $0x60] sm:$0xff]  ;;  %v83_v36 = vadd.f32 %v52_v30, %v21_v28  ;;  %v24_v37 = vld [vmem:[%s433_s0 + $0x68] sm:$0xff]  ;;  %v84_v39 = vadd.f32 %v53_v32, %v22_v31  ;;  %v25_v40 = vld [vmem:[%s433_s0 + $0x70] sm:$0xff] }
   0xa   :  { %109 = vst [vmem:[%s435_s2 + $0x28] sm:$0xff] %v78_v17  ;;  %v54_v35 = vld [vmem:[%s434_s1 + $0x60] sm:$0xff]  ;;  %v55_v38 = vld [vmem:[%s434_s1 + $0x68] sm:$0xff]  ;;  %v56_v41 = vld [vmem:[%s434_s1 + $0x70] sm:$0xff] }
   0xb   :  { %110 = vst [vmem:[%s435_s2 + $0x30] sm:$0xff] %v79_v21  ;;  %v85_v42 = vadd.f32 %v54_v35, %v23_v34  ;;  %v26_v43 = vld [vmem:[%s433_s0 + $0x78] sm:$0xff]  ;;  %v86_v45 = vadd.f32 %v55_v38, %v24_v37  ;;  %v27_v46 = vld [vmem:[%s433_s0 + $0x80] sm:$0xff]  ;;  %v87_v48 = vadd.f32 %v56_v41, %v25_v40  ;;  %v28_v49 = vld [vmem:[%s433_s0 + $0x88] sm:$0xff] }
   0xc   :  { %111 = vst [vmem:[%s435_s2 + $0x38] sm:$0xff] %v80_v25  ;;  %v57_v44 = vld [vmem:[%s434_s1 + $0x78] sm:$0xff]  ;;  %v58_v47 = vld [vmem:[%s434_s1 + $0x80] sm:$0xff]  ;;  %v59_v50 = vld [vmem:[%s434_s1 + $0x88] sm:$0xff] }
   0xd   :  { %112 = vst [vmem:[%s435_s2 + $0x40] sm:$0xff] %v81_v29  ;;  %v88_v51 = vadd.f32 %v57_v44, %v26_v43  ;;  %v29_v52 = vld [vmem:[%s433_s0 + $0x90] sm:$0xff]  ;;  %v89_v54 = vadd.f32 %v58_v47, %v27_v46  ;;  %v30_v55 = vld [vmem:[%s433_s0 + $0x98] sm:$0xff]  ;;  %v90_v57 = vadd.f32 %v59_v50, %v28_v49  ;;  %v31_v58 = vld [vmem:[%s433_s0 + $0xa0] sm:$0xff] }
   0xe   :  { %113 = vst [vmem:[%s435_s2 + $0x48] sm:$0xff] %v82_v33  ;;  %v60_v53 = vld [vmem:[%s434_s1 + $0x90] sm:$0xff]  ;;  %v61_v56 = vld [vmem:[%s434_s1 + $0x98] sm:$0xff]  ;;  %v62_v59 = vld [vmem:[%s434_s1 + $0xa0] sm:$0xff] }
   0xf   :  { %114 = vst [vmem:[%s435_s2 + $0x50] sm:$0xff] %v83_v36  ;;  %v91_v60 = vadd.f32 %v60_v53, %v29_v52  ;;  %v32_v61 = vld [vmem:[%s433_s0 + $0xa8] sm:$0xff]  ;;  %v92_v63 = vadd.f32 %v61_v56, %v30_v55  ;;  %v33_v0 = vld [vmem:[%s433_s0 + $0xb0] sm:$0xff]  ;;  %v93_v2 = vadd.f32 %v62_v59, %v31_v58  ;;  %v34_v3 = vld [vmem:[%s433_s0 + $0xb8] sm:$0xff] }
  0x10   :  { %115 = vst [vmem:[%s435_s2 + $0x58] sm:$0xff] %v84_v39  ;;  %v63_v62 = vld [vmem:[%s434_s1 + $0xa8] sm:$0xff]  ;;  %v64_v1 = vld [vmem:[%s434_s1 + $0xb0] sm:$0xff]  ;;  %v65_v4 = vld [vmem:[%s434_s1 + $0xb8] sm:$0xff] }
  0x11   :  { %116 = vst [vmem:[%s435_s2 + $0x60] sm:$0xff] %v85_v42  ;;  %v94_v5 = vadd.f32 %v63_v62, %v32_v61  ;;  %v35_v6 = vld [vmem:[%s433_s0 + $0xc0] sm:$0xff]  ;;  %v95_v8 = vadd.f32 %v64_v1, %v33_v0  ;;  %v36_v9 = vld [vmem:[%s433_s0 + $0xc8] sm:$0xff]  ;;  %v96_v11 = vadd.f32 %v65_v4, %v34_v3  ;;  %v37_v12 = vld [vmem:[%s433_s0 + $0xd0] sm:$0xff] }
  0x12   :  { %117 = vst [vmem:[%s435_s2 + $0x68] sm:$0xff] %v86_v45  ;;  %v66_v7 = vld [vmem:[%s434_s1 + $0xc0] sm:$0xff]  ;;  %v67_v10 = vld [vmem:[%s434_s1 + $0xc8] sm:$0xff]  ;;  %v68_v13 = vld [vmem:[%s434_s1 + $0xd0] sm:$0xff] }
  0x13   :  { %118 = vst [vmem:[%s435_s2 + $0x70] sm:$0xff] %v87_v48  ;;  %v97_v14 = vadd.f32 %v66_v7, %v35_v6  ;;  %v38_v15 = vld [vmem:[%s433_s0 + $0xd8] sm:$0xff]  ;;  %v98_v17 = vadd.f32 %v67_v10, %v36_v9  ;;  %v39_v18 = vld [vmem:[%s433_s0 + $0xe0] sm:$0xff]  ;;  %v99_v20 = vadd.f32 %v68_v13, %v37_v12  ;;  %v40_v21 = vld [vmem:[%s433_s0 + $0xe8] sm:$0xff] }
  0x14   :  { %119 = vst [vmem:[%s435_s2 + $0x78] sm:$0xff] %v88_v51  ;;  %v69_v16 = vld [vmem:[%s434_s1 + $0xd8] sm:$0xff]  ;;  %v70_v19 = vld [vmem:[%s434_s1 + $0xe0] sm:$0xff]  ;;  %v71_v22 = vld [vmem:[%s434_s1 + $0xe8] sm:$0xff] }
  0x15   :  { %120 = vst [vmem:[%s435_s2 + $0x80] sm:$0xff] %v89_v54  ;;  %v100_v23 = vadd.f32 %v69_v16, %v38_v15  ;;  %v41_v24 = vld [vmem:[%s433_s0 + $0xf0] sm:$0x1f]  ;;  %v101_v26 = vadd.f32 %v70_v19, %v39_v18  ;;  %v102_v27 = vadd.f32 %v71_v22, %v40_v21 }
  0x16   :  { %121 = vst [vmem:[%s435_s2 + $0x88] sm:$0xff] %v90_v57  ;;  %v72_v25 = vld [vmem:[%s434_s1 + $0xf0] sm:$0x1f] }
  0x17   :  { %122 = vst [vmem:[%s435_s2 + $0x90] sm:$0xff] %v91_v60  ;;  %v103_v28 = vadd.f32 %v72_v25, %v41_v24 }
  0x18   :  { %123 = vst [vmem:[%s435_s2 + $0x98] sm:$0xff] %v92_v63 }
  0x19   :  { %124 = vst [vmem:[%s435_s2 + $0xa0] sm:$0xff] %v93_v2 }
  0x1a   :  { %125 = vst [vmem:[%s435_s2 + $0xa8] sm:$0xff] %v94_v5 }
  0x1b   :  { %126 = vst [vmem:[%s435_s2 + $0xb0] sm:$0xff] %v95_v8 }
  0x1c   :  { %127 = vst [vmem:[%s435_s2 + $0xb8] sm:$0xff] %v96_v11 }
  0x1d   :  { %128 = vst [vmem:[%s435_s2 + $0xc0] sm:$0xff] %v97_v14 }
  0x1e   :  { %129 = vst [vmem:[%s435_s2 + $0xc8] sm:$0xff] %v98_v17 }
  0x1f   :  { %130 = vst [vmem:[%s435_s2 + $0xd0] sm:$0xff] %v99_v20 }
  0x20   :  { %131 = vst [vmem:[%s435_s2 + $0xd8] sm:$0xff] %v100_v23 }
  0x21   :  { %132 = vst [vmem:[%s435_s2 + $0xe0] sm:$0xff] %v101_v26 }
  0x22   :  { %133 = vst [vmem:[%s435_s2 + $0xe8] sm:$0xff] %v102_v27 }
  0x23   :  { %134 = vst [vmem:[%s435_s2 + $0xf0] sm:$0x1f] %v103_v28 }

</bundles_post_ra>
